<compile_context>
chip_gen: v5e
topology: v5e:2x2
jax: 0.10.0
libtpu: 0.0.40
codegen_flags: <defaults>
</compile_context>

<pallas_src>
import jax
import jax.numpy as jnp
from jax import lax
from jax.experimental import pallas as pl
from jax.experimental.pallas import tpu as pltpu

DILATIONS = (1, 2, 4, 8)
HALO = 8                                           # max dilation -> halo width
UNIQUE_SHIFTS = (-8, -4, -2, -1, 0, 1, 2, 4, 8)    # union of all taps


def _make_kernel(bt, L):
    """Kernel closure over the static per-step batch count and length L."""

    def kernel(x_ref, w_ref, shift_ref, o_ref):
        # x_ref:     (bt, C_in, L + 2*HALO)  zero-padded input block (NCL)
        # w_ref:     (S, C_in, C_out)        BN-scale-folded weights, resident
        # shift_ref: (C_out, 1)              folded BN shift (f32), resident
        # o_ref:     (bt, C_out, L)
        shift = shift_ref[...]
        for b in range(bt):                        # static unroll, bt is small
            xb = x_ref[b]                          # (C_in, L + 2*HALO), 1 load
            acc = None
            for si, off in enumerate(UNIQUE_SHIFTS):
                xs = xb[:, HALO + off: HALO + off + L]          # (C_in, L)
                # Contract dim 0 of both operands: weight contraction axis is
                # already on sublanes, result lands as (C_out, L) lane-dense.
                p = lax.dot_general(
                    w_ref[si], xs,
                    dimension_numbers=(((0,), (0,)), ((), ())),
                    preferred_element_type=jnp.float32)         # (C_out, L)
                acc = p if acc is None else acc + p
            # Folded-BN shift + ReLU in f32; one full-tile lane-dense store.
            o_ref[b] = jnp.maximum(acc + shift, 0.0).astype(o_ref.dtype)

    return kernel


def _pick_batch_block(B, per_batch_bytes, *, vmem_budget_bytes=20 << 20,
                      min_split_bytes=1 << 20):
    """Largest bt (dividing B) whose double-buffered block fits the VMEM
    budget.  Only split into >=2 grid steps (DMA/compute overlap + v7x 2-TC
    sharding) when each step stays >= min_split_bytes; never shrink small
    problems into narrow blocks (single-TC chips want maximal blocks)."""
    bt = max(1, min(B, vmem_budget_bytes // max(per_batch_bytes, 1)))
    while bt > 1 and B % bt:
        bt -= 1
    if bt == B and B > 1:
        half = B // 2
        while half > 1 and B % half:
            half -= 1
        if B % half == 0 and half * per_batch_bytes >= min_split_bytes:
            bt = half
    return bt


def dilated_cov_module(x, conv_w, gamma, beta, mean, var, *, eps=1e-5,
                       compute_dtype=jnp.float32, out_dtype=None):
    """Forward pass of DilatedCovModule.

    x:       (B, C_in, L) float32, NCL layout (PyTorch Conv1d convention).
    conv_w:  sequence of 4 arrays (co, C_in, 3) -- PyTorch OIH weights for
             dilations 1, 2, 4, 8 (co = channels_out // 4).
    gamma, beta, mean, var: sequences of 4 arrays (co,), eval-mode BN params.
    compute_dtype: matmul operand dtype (bf16 recommended on v6e/v7x, f32 on v5e).
    out_dtype: output dtype (defaults to x.dtype; bf16 halves store traffic).
    """
    B, C_in, L = x.shape
    co = conv_w[0].shape[0]
    C_out = 4 * co
    S = len(UNIQUE_SHIFTS)
    out_dtype = x.dtype if out_dtype is None else out_dtype
    shift_col = {s: i for i, s in enumerate(UNIQUE_SHIFTS)}

    # ---- wrapper-side packing (f32, cast last) -----------------------------
    # Fold the BN scale into the conv weights (conv is linear -> exact) and
    # pack every (dilation, tap) into one (S, C_in, C_out) tensor, contraction
    # axis (C_in) leading.  Columns with no tap at a shift stay zero.
    w_packed = jnp.zeros((S, C_in, C_out), jnp.float32)
    bn_shift = []
    for di, d in enumerate(DILATIONS):
        scale = gamma[di].astype(jnp.float32) / jnp.sqrt(
            var[di].astype(jnp.float32) + eps)                     # (co,)
        bn_shift.append(beta[di].astype(jnp.float32)
                        - mean[di].astype(jnp.float32) * scale)    # (co,)
        w_fold = conv_w[di].astype(jnp.float32) * scale[:, None, None]
        for k, off in enumerate((-d, 0, d)):                       # taps 0,1,2
            si = shift_col[off]
            w_packed = w_packed.at[si, :, di * co:(di + 1) * co].set(
                w_fold[:, :, k].T)
    bn_shift = jnp.concatenate(bn_shift).reshape(C_out, 1).astype(jnp.float32)

    # Zero-pad each batch element's L axis with an 8-sample halo on both sides:
    # "same" padding of every dilated branch becomes a plain static slice.
    x_pad = jnp.pad(x.astype(compute_dtype), ((0, 0), (0, 0), (HALO, HALO)))
    L_pad = L + 2 * HALO
    w_packed = w_packed.astype(compute_dtype)

    in_bytes = jnp.dtype(compute_dtype).itemsize
    out_bytes = jnp.dtype(out_dtype).itemsize
    per_b = (2 * C_in * L_pad * in_bytes      # double-buffered input block
             + 2 * C_out * L * out_bytes      # double-buffered output block
             + C_out * L * 4)                 # f32 accumulator
    bt = _pick_batch_block(B, per_b)
    grid = (B // bt,)
    # TODO(synk): for very large L additionally tile L with a +-8 halo (manual
    # DMA of overlapping windows) so even bt=1 blocks fit v7x's 64 MiB VMEM.

    out = pl.pallas_call(
        _make_kernel(bt, L),
        out_shape=jax.ShapeDtypeStruct((B, C_out, L), out_dtype),
        grid_spec=pltpu.PrefetchScalarGridSpec(
            num_scalar_prefetch=0,
            grid=grid,
            in_specs=[
                pl.BlockSpec((bt, C_in, L_pad), lambda i: (i, 0, 0)),
                pl.BlockSpec((S, C_in, C_out), lambda i: (0, 0, 0)),
                pl.BlockSpec((C_out, 1), lambda i: (0, 0)),
            ],
            out_specs=pl.BlockSpec((bt, C_out, L), lambda i: (i, 0, 0)),
        ),
        compiler_params=pltpu.CompilerParams(
            dimension_semantics=("parallel",),
            vmem_limit_bytes=32 << 20),
    )(x_pad, w_packed, bn_shift)
    return out


def _reference(x, conv_w, gamma, beta, mean, var, eps=1e-5):
    """Pure-JAX reference: 4 dilated convs + eval-mode BN + ReLU + concat."""
    outs = []
    for di, d in enumerate(DILATIONS):
        y = lax.conv_general_dilated(
            x, conv_w[di], window_strides=(1,), padding=[(d, d)],
            rhs_dilation=(d,), dimension_numbers=("NCH", "OIH", "NCH"),
            precision=lax.Precision.HIGHEST)
        s = gamma[di][None, :, None] / jnp.sqrt(var[di][None, :, None] + eps)
        y = s * (y - mean[di][None, :, None]) + beta[di][None, :, None]
        outs.append(jax.nn.relu(y))
    return jnp.concatenate(outs, axis=1)


if __name__ == "__main__":
    # TODO(synk): PyTorch default-training-mode BN (batch statistics) is not
    # reproduced; eval-mode (running-stats) semantics are used instead.
    eps = 1e-5

    def run_case(B, C_in, L, channels_out, keys):
        co = channels_out // 4
        x = jax.random.normal(keys[0], (B, C_in, L), dtype=jnp.float32)
        conv_w = [jax.random.normal(keys[1 + i], (co, C_in, 3), jnp.float32) * 0.1
                  for i in range(4)]
        gamma = [1.0 + 0.1 * jnp.arange(co, dtype=jnp.float32) + i for i in range(4)]
        beta = [0.05 * jnp.arange(co, dtype=jnp.float32) - 0.1 * i for i in range(4)]
        mean = [0.02 * jnp.arange(co, dtype=jnp.float32) * (i + 1) for i in range(4)]
        var = [1.0 + 0.03 * jnp.arange(co, dtype=jnp.float32) + 0.1 * i
               for i in range(4)]

        ref = _reference(x, conv_w, gamma, beta, mean, var, eps)

        # f32 operands: strict semantics check.
        out = dilated_cov_module(x, conv_w, gamma, beta, mean, var, eps=eps,
                                 compute_dtype=jnp.float32)
        out = jax.block_until_ready(out)
        assert out.shape == (B, channels_out, L), out.shape
        assert jnp.allclose(out, ref, atol=1e-4, rtol=1e-4), (
            float(jnp.max(jnp.abs(out - ref))))

        # bf16 matmul operands (v6e/v7x recommendation), f32 accumulation/output.
        out_bf16 = dilated_cov_module(x, conv_w, gamma, beta, mean, var, eps=eps,
                                      compute_dtype=jnp.bfloat16,
                                      out_dtype=jnp.float32)
        out_bf16 = jax.block_until_ready(out_bf16)
        assert out_bf16.shape == (B, channels_out, L), out_bf16.shape
        assert jnp.allclose(out_bf16, ref, atol=1e-1, rtol=1e-1), (
            float(jnp.max(jnp.abs(out_bf16 - ref))))

    keys = jax.random.split(jax.random.PRNGKey(0), 10)
    # Primary small case (pow-2 L, lane-dense stores).
    run_case(B=2, C_in=8, L=128, channels_out=16, keys=keys[:5])
    # Non-power-of-two L, odd channel counts, B=3 (exercises padding/halo path).
    run_case(B=3, C_in=5, L=100, channels_out=12, keys=keys[5:10])

    print("KERNEL_OK")
</pallas_src>

<mosaic_0001>
module attributes {stable_mosaic.version = 11 : i64} {
  func.func @kernel(%arg0: i32, %arg1: memref<2x8x144xf32, #tpu.memory_space<vmem>>, %arg2: memref<9x8x16xf32, #tpu.memory_space<vmem>>, %arg3: memref<16x1xf32, #tpu.memory_space<vmem>>, %arg4: memref<2x16x128xf32, #tpu.memory_space<vmem>>) attributes {dimension_semantics = [#tpu.dimension_semantics<parallel>], iteration_bounds = array<i64: 1>, scalar_prefetch = 0 : i64, scratch_operands = 0 : i64, tpu.core_type = #tpu.core_type<tc>, window_params = [{transform_indices = @transform_0, window_bounds = array<i64: 2, 8, 144>}, {pipeline_mode = #tpu.pipeline_mode<synchronous>, transform_indices = @transform_1, window_bounds = array<i64: 9, 8, 16>}, {pipeline_mode = #tpu.pipeline_mode<synchronous>, transform_indices = @transform_2, window_bounds = array<i64: 16, 1>}, {transform_indices = @transform_3, window_bounds = array<i64: 2, 16, 128>}]} {
    %c0 = arith.constant 0 : index
    %c0_0 = arith.constant 0 : index
    %0 = vector.load %arg3[%c0, %c0_0] : memref<16x1xf32, #tpu.memory_space<vmem>>, vector<16x1xf32>
    %c0_1 = arith.constant 0 : index
    %c0_2 = arith.constant 0 : index
    %c0_3 = arith.constant 0 : index
    %1 = vector.load %arg1[%c0_1, %c0_2, %c0_3] : memref<2x8x144xf32, #tpu.memory_space<vmem>>, vector<1x8x144xf32>
    %2 = vector.shape_cast %1 : vector<1x8x144xf32> to vector<8x144xf32>
    %3 = vector.extract_strided_slice %2 {offsets = [0, 0], sizes = [8, 128], strides = [1, 1]} : vector<8x144xf32> to vector<8x128xf32>
    %c0_4 = arith.constant 0 : index
    %c0_5 = arith.constant 0 : index
    %c0_6 = arith.constant 0 : index
    %4 = vector.load %arg2[%c0_4, %c0_5, %c0_6] : memref<9x8x16xf32, #tpu.memory_space<vmem>>, vector<1x8x16xf32>
    %5 = vector.shape_cast %4 : vector<1x8x16xf32> to vector<8x16xf32>
    %cst = arith.constant dense<0.000000e+00> : vector<16x128xf32>
    %6 = tpu.matmul %5, %3, %cst {dimension_numbers = #tpu.dot_dimension_numbers<[0], [0], [1], [1], [0, 1, 1, 1], [], []>} : vector<8x16xf32>, vector<8x128xf32>, vector<16x128xf32> -> vector<16x128xf32>
    %7 = vector.extract_strided_slice %2 {offsets = [0, 4], sizes = [8, 128], strides = [1, 1]} : vector<8x144xf32> to vector<8x128xf32>
    %c1 = arith.constant 1 : index
    %c0_7 = arith.constant 0 : index
    %c0_8 = arith.constant 0 : index
    %8 = vector.load %arg2[%c1, %c0_7, %c0_8] : memref<9x8x16xf32, #tpu.memory_space<vmem>>, vector<1x8x16xf32>
    %9 = vector.shape_cast %8 : vector<1x8x16xf32> to vector<8x16xf32>
    %cst_9 = arith.constant dense<0.000000e+00> : vector<16x128xf32>
    %10 = tpu.matmul %9, %7, %cst_9 {dimension_numbers = #tpu.dot_dimension_numbers<[0], [0], [1], [1], [0, 1, 1, 1], [], []>} : vector<8x16xf32>, vector<8x128xf32>, vector<16x128xf32> -> vector<16x128xf32>
    %11 = arith.addf %6, %10 : vector<16x128xf32>
    %12 = vector.extract_strided_slice %2 {offsets = [0, 6], sizes = [8, 128], strides = [1, 1]} : vector<8x144xf32> to vector<8x128xf32>
    %c2 = arith.constant 2 : index
    %c0_10 = arith.constant 0 : index
    %c0_11 = arith.constant 0 : index
    %13 = vector.load %arg2[%c2, %c0_10, %c0_11] : memref<9x8x16xf32, #tpu.memory_space<vmem>>, vector<1x8x16xf32>
    %14 = vector.shape_cast %13 : vector<1x8x16xf32> to vector<8x16xf32>
    %cst_12 = arith.constant dense<0.000000e+00> : vector<16x128xf32>
    %15 = tpu.matmul %14, %12, %cst_12 {dimension_numbers = #tpu.dot_dimension_numbers<[0], [0], [1], [1], [0, 1, 1, 1], [], []>} : vector<8x16xf32>, vector<8x128xf32>, vector<16x128xf32> -> vector<16x128xf32>
    %16 = arith.addf %11, %15 : vector<16x128xf32>
    %17 = vector.extract_strided_slice %2 {offsets = [0, 7], sizes = [8, 128], strides = [1, 1]} : vector<8x144xf32> to vector<8x128xf32>
    %c3 = arith.constant 3 : index
    %c0_13 = arith.constant 0 : index
    %c0_14 = arith.constant 0 : index
    %18 = vector.load %arg2[%c3, %c0_13, %c0_14] : memref<9x8x16xf32, #tpu.memory_space<vmem>>, vector<1x8x16xf32>
    %19 = vector.shape_cast %18 : vector<1x8x16xf32> to vector<8x16xf32>
    %cst_15 = arith.constant dense<0.000000e+00> : vector<16x128xf32>
    %20 = tpu.matmul %19, %17, %cst_15 {dimension_numbers = #tpu.dot_dimension_numbers<[0], [0], [1], [1], [0, 1, 1, 1], [], []>} : vector<8x16xf32>, vector<8x128xf32>, vector<16x128xf32> -> vector<16x128xf32>
    %21 = arith.addf %16, %20 : vector<16x128xf32>
    %22 = vector.extract_strided_slice %2 {offsets = [0, 8], sizes = [8, 128], strides = [1, 1]} : vector<8x144xf32> to vector<8x128xf32>
    %c4 = arith.constant 4 : index
    %c0_16 = arith.constant 0 : index
    %c0_17 = arith.constant 0 : index
    %23 = vector.load %arg2[%c4, %c0_16, %c0_17] : memref<9x8x16xf32, #tpu.memory_space<vmem>>, vector<1x8x16xf32>
    %24 = vector.shape_cast %23 : vector<1x8x16xf32> to vector<8x16xf32>
    %cst_18 = arith.constant dense<0.000000e+00> : vector<16x128xf32>
    %25 = tpu.matmul %24, %22, %cst_18 {dimension_numbers = #tpu.dot_dimension_numbers<[0], [0], [1], [1], [0, 1, 1, 1], [], []>} : vector<8x16xf32>, vector<8x128xf32>, vector<16x128xf32> -> vector<16x128xf32>
    %26 = arith.addf %21, %25 : vector<16x128xf32>
    %27 = vector.extract_strided_slice %2 {offsets = [0, 9], sizes = [8, 128], strides = [1, 1]} : vector<8x144xf32> to vector<8x128xf32>
    %c5 = arith.constant 5 : index
    %c0_19 = arith.constant 0 : index
    %c0_20 = arith.constant 0 : index
    %28 = vector.load %arg2[%c5, %c0_19, %c0_20] : memref<9x8x16xf32, #tpu.memory_space<vmem>>, vector<1x8x16xf32>
    %29 = vector.shape_cast %28 : vector<1x8x16xf32> to vector<8x16xf32>
    %cst_21 = arith.constant dense<0.000000e+00> : vector<16x128xf32>
    %30 = tpu.matmul %29, %27, %cst_21 {dimension_numbers = #tpu.dot_dimension_numbers<[0], [0], [1], [1], [0, 1, 1, 1], [], []>} : vector<8x16xf32>, vector<8x128xf32>, vector<16x128xf32> -> vector<16x128xf32>
    %31 = arith.addf %26, %30 : vector<16x128xf32>
    %32 = vector.extract_strided_slice %2 {offsets = [0, 10], sizes = [8, 128], strides = [1, 1]} : vector<8x144xf32> to vector<8x128xf32>
    %c6 = arith.constant 6 : index
    %c0_22 = arith.constant 0 : index
    %c0_23 = arith.constant 0 : index
    %33 = vector.load %arg2[%c6, %c0_22, %c0_23] : memref<9x8x16xf32, #tpu.memory_space<vmem>>, vector<1x8x16xf32>
    %34 = vector.shape_cast %33 : vector<1x8x16xf32> to vector<8x16xf32>
    %cst_24 = arith.constant dense<0.000000e+00> : vector<16x128xf32>
    %35 = tpu.matmul %34, %32, %cst_24 {dimension_numbers = #tpu.dot_dimension_numbers<[0], [0], [1], [1], [0, 1, 1, 1], [], []>} : vector<8x16xf32>, vector<8x128xf32>, vector<16x128xf32> -> vector<16x128xf32>
    %36 = arith.addf %31, %35 : vector<16x128xf32>
    %37 = vector.extract_strided_slice %2 {offsets = [0, 12], sizes = [8, 128], strides = [1, 1]} : vector<8x144xf32> to vector<8x128xf32>
    %c7 = arith.constant 7 : index
    %c0_25 = arith.constant 0 : index
    %c0_26 = arith.constant 0 : index
    %38 = vector.load %arg2[%c7, %c0_25, %c0_26] : memref<9x8x16xf32, #tpu.memory_space<vmem>>, vector<1x8x16xf32>
    %39 = vector.shape_cast %38 : vector<1x8x16xf32> to vector<8x16xf32>
    %cst_27 = arith.constant dense<0.000000e+00> : vector<16x128xf32>
    %40 = tpu.matmul %39, %37, %cst_27 {dimension_numbers = #tpu.dot_dimension_numbers<[0], [0], [1], [1], [0, 1, 1, 1], [], []>} : vector<8x16xf32>, vector<8x128xf32>, vector<16x128xf32> -> vector<16x128xf32>
    %41 = arith.addf %36, %40 : vector<16x128xf32>
    %42 = vector.extract_strided_slice %2 {offsets = [0, 16], sizes = [8, 128], strides = [1, 1]} : vector<8x144xf32> to vector<8x128xf32>
    %c8 = arith.constant 8 : index
    %c0_28 = arith.constant 0 : index
    %c0_29 = arith.constant 0 : index
    %43 = vector.load %arg2[%c8, %c0_28, %c0_29] : memref<9x8x16xf32, #tpu.memory_space<vmem>>, vector<1x8x16xf32>
    %44 = vector.shape_cast %43 : vector<1x8x16xf32> to vector<8x16xf32>
    %cst_30 = arith.constant dense<0.000000e+00> : vector<16x128xf32>
    %45 = tpu.matmul %44, %42, %cst_30 {dimension_numbers = #tpu.dot_dimension_numbers<[0], [0], [1], [1], [0, 1, 1, 1], [], []>} : vector<8x16xf32>, vector<8x128xf32>, vector<16x128xf32> -> vector<16x128xf32>
    %46 = arith.addf %41, %45 : vector<16x128xf32>
    %47 = vector.broadcast %0 : vector<16x1xf32> to vector<16x128xf32>
    %48 = arith.addf %46, %47 : vector<16x128xf32>
    %cst_31 = arith.constant 0.000000e+00 : f32
    %49 = vector.broadcast %cst_31 : f32 to vector<16x128xf32>
    %50 = arith.maximumf %48, %49 : vector<16x128xf32>
    %c0_32 = arith.constant 0 : index
    %c0_33 = arith.constant 0 : index
    %c0_34 = arith.constant 0 : index
    %51 = vector.load %arg4[%c0_32, %c0_33, %c0_34] : memref<2x16x128xf32, #tpu.memory_space<vmem>>, vector<1x16x128xf32>
    %52 = vector.shape_cast %51 : vector<1x16x128xf32> to vector<16x128xf32>
    %53 = vector.shape_cast %50 : vector<16x128xf32> to vector<1x16x128xf32>
    tpu.vector_store %arg4[%c0_32, %c0_33, %c0_34], %53 {strides = array<i32>} : memref<2x16x128xf32, #tpu.memory_space<vmem>>, vector<1x16x128xf32>,
    %c1_35 = arith.constant 1 : index
    %c0_36 = arith.constant 0 : index
    %c0_37 = arith.constant 0 : index
    %54 = vector.load %arg1[%c1_35, %c0_36, %c0_37] : memref<2x8x144xf32, #tpu.memory_space<vmem>>, vector<1x8x144xf32>
    %55 = vector.shape_cast %54 : vector<1x8x144xf32> to vector<8x144xf32>
    %56 = vector.extract_strided_slice %55 {offsets = [0, 0], sizes = [8, 128], strides = [1, 1]} : vector<8x144xf32> to vector<8x128xf32>
    %c0_38 = arith.constant 0 : index
    %c0_39 = arith.constant 0 : index
    %c0_40 = arith.constant 0 : index
    %57 = vector.load %arg2[%c0_38, %c0_39, %c0_40] : memref<9x8x16xf32, #tpu.memory_space<vmem>>, vector<1x8x16xf32>
    %58 = vector.shape_cast %57 : vector<1x8x16xf32> to vector<8x16xf32>
    %cst_41 = arith.constant dense<0.000000e+00> : vector<16x128xf32>
    %59 = tpu.matmul %58, %56, %cst_41 {dimension_numbers = #tpu.dot_dimension_numbers<[0], [0], [1], [1], [0, 1, 1, 1], [], []>} : vector<8x16xf32>, vector<8x128xf32>, vector<16x128xf32> -> vector<16x128xf32>
    %60 = vector.extract_strided_slice %55 {offsets = [0, 4], sizes = [8, 128], strides = [1, 1]} : vector<8x144xf32> to vector<8x128xf32>
    %c1_42 = arith.constant 1 : index
    %c0_43 = arith.constant 0 : index
    %c0_44 = arith.constant 0 : index
    %61 = vector.load %arg2[%c1_42, %c0_43, %c0_44] : memref<9x8x16xf32, #tpu.memory_space<vmem>>, vector<1x8x16xf32>
    %62 = vector.shape_cast %61 : vector<1x8x16xf32> to vector<8x16xf32>
    %cst_45 = arith.constant dense<0.000000e+00> : vector<16x128xf32>
    %63 = tpu.matmul %62, %60, %cst_45 {dimension_numbers = #tpu.dot_dimension_numbers<[0], [0], [1], [1], [0, 1, 1, 1], [], []>} : vector<8x16xf32>, vector<8x128xf32>, vector<16x128xf32> -> vector<16x128xf32>
    %64 = arith.addf %59, %63 : vector<16x128xf32>
    %65 = vector.extract_strided_slice %55 {offsets = [0, 6], sizes = [8, 128], strides = [1, 1]} : vector<8x144xf32> to vector<8x128xf32>
    %c2_46 = arith.constant 2 : index
    %c0_47 = arith.constant 0 : index
    %c0_48 = arith.constant 0 : index
    %66 = vector.load %arg2[%c2_46, %c0_47, %c0_48] : memref<9x8x16xf32, #tpu.memory_space<vmem>>, vector<1x8x16xf32>
    %67 = vector.shape_cast %66 : vector<1x8x16xf32> to vector<8x16xf32>
    %cst_49 = arith.constant dense<0.000000e+00> : vector<16x128xf32>
    %68 = tpu.matmul %67, %65, %cst_49 {dimension_numbers = #tpu.dot_dimension_numbers<[0], [0], [1], [1], [0, 1, 1, 1], [], []>} : vector<8x16xf32>, vector<8x128xf32>, vector<16x128xf32> -> vector<16x128xf32>
    %69 = arith.addf %64, %68 : vector<16x128xf32>
    %70 = vector.extract_strided_slice %55 {offsets = [0, 7], sizes = [8, 128], strides = [1, 1]} : vector<8x144xf32> to vector<8x128xf32>
    %c3_50 = arith.constant 3 : index
    %c0_51 = arith.constant 0 : index
    %c0_52 = arith.constant 0 : index
    %71 = vector.load %arg2[%c3_50, %c0_51, %c0_52] : memref<9x8x16xf32, #tpu.memory_space<vmem>>, vector<1x8x16xf32>
    %72 = vector.shape_cast %71 : vector<1x8x16xf32> to vector<8x16xf32>
    %cst_53 = arith.constant dense<0.000000e+00> : vector<16x128xf32>
    %73 = tpu.matmul %72, %70, %cst_53 {dimension_numbers = #tpu.dot_dimension_numbers<[0], [0], [1], [1], [0, 1, 1, 1], [], []>} : vector<8x16xf32>, vector<8x128xf32>, vector<16x128xf32> -> vector<16x128xf32>
    %74 = arith.addf %69, %73 : vector<16x128xf32>
    %75 = vector.extract_strided_slice %55 {offsets = [0, 8], sizes = [8, 128], strides = [1, 1]} : vector<8x144xf32> to vector<8x128xf32>
    %c4_54 = arith.constant 4 : index
    %c0_55 = arith.constant 0 : index
    %c0_56 = arith.constant 0 : index
    %76 = vector.load %arg2[%c4_54, %c0_55, %c0_56] : memref<9x8x16xf32, #tpu.memory_space<vmem>>, vector<1x8x16xf32>
    %77 = vector.shape_cast %76 : vector<1x8x16xf32> to vector<8x16xf32>
    %cst_57 = arith.constant dense<0.000000e+00> : vector<16x128xf32>
    %78 = tpu.matmul %77, %75, %cst_57 {dimension_numbers = #tpu.dot_dimension_numbers<[0], [0], [1], [1], [0, 1, 1, 1], [], []>} : vector<8x16xf32>, vector<8x128xf32>, vector<16x128xf32> -> vector<16x128xf32>
    %79 = arith.addf %74, %78 : vector<16x128xf32>
    %80 = vector.extract_strided_slice %55 {offsets = [0, 9], sizes = [8, 128], strides = [1, 1]} : vector<8x144xf32> to vector<8x128xf32>
    %c5_58 = arith.constant 5 : index
    %c0_59 = arith.constant 0 : index
    %c0_60 = arith.constant 0 : index
    %81 = vector.load %arg2[%c5_58, %c0_59, %c0_60] : memref<9x8x16xf32, #tpu.memory_space<vmem>>, vector<1x8x16xf32>
    %82 = vector.shape_cast %81 : vector<1x8x16xf32> to vector<8x16xf32>
    %cst_61 = arith.constant dense<0.000000e+00> : vector<16x128xf32>
    %83 = tpu.matmul %82, %80, %cst_61 {dimension_numbers = #tpu.dot_dimension_numbers<[0], [0], [1], [1], [0, 1, 1, 1], [], []>} : vector<8x16xf32>, vector<8x128xf32>, vector<16x128xf32> -> vector<16x128xf32>
    %84 = arith.addf %79, %83 : vector<16x128xf32>
    %85 = vector.extract_strided_slice %55 {offsets = [0, 10], sizes = [8, 128], strides = [1, 1]} : vector<8x144xf32> to vector<8x128xf32>
    %c6_62 = arith.constant 6 : index
    %c0_63 = arith.constant 0 : index
    %c0_64 = arith.constant 0 : index
    %86 = vector.load %arg2[%c6_62, %c0_63, %c0_64] : memref<9x8x16xf32, #tpu.memory_space<vmem>>, vector<1x8x16xf32>
    %87 = vector.shape_cast %86 : vector<1x8x16xf32> to vector<8x16xf32>
    %cst_65 = arith.constant dense<0.000000e+00> : vector<16x128xf32>
    %88 = tpu.matmul %87, %85, %cst_65 {dimension_numbers = #tpu.dot_dimension_numbers<[0], [0], [1], [1], [0, 1, 1, 1], [], []>} : vector<8x16xf32>, vector<8x128xf32>, vector<16x128xf32> -> vector<16x128xf32>
    %89 = arith.addf %84, %88 : vector<16x128xf32>
    %90 = vector.extract_strided_slice %55 {offsets = [0, 12], sizes = [8, 128], strides = [1, 1]} : vector<8x144xf32> to vector<8x128xf32>
    %c7_66 = arith.constant 7 : index
    %c0_67 = arith.constant 0 : index
    %c0_68 = arith.constant 0 : index
    %91 = vector.load %arg2[%c7_66, %c0_67, %c0_68] : memref<9x8x16xf32, #tpu.memory_space<vmem>>, vector<1x8x16xf32>
    %92 = vector.shape_cast %91 : vector<1x8x16xf32> to vector<8x16xf32>
    %cst_69 = arith.constant dense<0.000000e+00> : vector<16x128xf32>
    %93 = tpu.matmul %92, %90, %cst_69 {dimension_numbers = #tpu.dot_dimension_numbers<[0], [0], [1], [1], [0, 1, 1, 1], [], []>} : vector<8x16xf32>, vector<8x128xf32>, vector<16x128xf32> -> vector<16x128xf32>
    %94 = arith.addf %89, %93 : vector<16x128xf32>
    %95 = vector.extract_strided_slice %55 {offsets = [0, 16], sizes = [8, 128], strides = [1, 1]} : vector<8x144xf32> to vector<8x128xf32>
    %c8_70 = arith.constant 8 : index
    %c0_71 = arith.constant 0 : index
    %c0_72 = arith.constant 0 : index
    %96 = vector.load %arg2[%c8_70, %c0_71, %c0_72] : memref<9x8x16xf32, #tpu.memory_space<vmem>>, vector<1x8x16xf32>
    %97 = vector.shape_cast %96 : vector<1x8x16xf32> to vector<8x16xf32>
    %cst_73 = arith.constant dense<0.000000e+00> : vector<16x128xf32>
    %98 = tpu.matmul %97, %95, %cst_73 {dimension_numbers = #tpu.dot_dimension_numbers<[0], [0], [1], [1], [0, 1, 1, 1], [], []>} : vector<8x16xf32>, vector<8x128xf32>, vector<16x128xf32> -> vector<16x128xf32>
    %99 = arith.addf %94, %98 : vector<16x128xf32>
    %100 = vector.broadcast %0 : vector<16x1xf32> to vector<16x128xf32>
    %101 = arith.addf %99, %100 : vector<16x128xf32>
    %cst_74 = arith.constant 0.000000e+00 : f32
    %102 = vector.broadcast %cst_74 : f32 to vector<16x128xf32>
    %103 = arith.maximumf %101, %102 : vector<16x128xf32>
    %c1_75 = arith.constant 1 : index
    %c0_76 = arith.constant 0 : index
    %c0_77 = arith.constant 0 : index
    %104 = vector.load %arg4[%c1_75, %c0_76, %c0_77] : memref<2x16x128xf32, #tpu.memory_space<vmem>>, vector<1x16x128xf32>
    %105 = vector.shape_cast %104 : vector<1x16x128xf32> to vector<16x128xf32>
    %106 = vector.shape_cast %103 : vector<16x128xf32> to vector<1x16x128xf32>
    tpu.vector_store %arg4[%c1_75, %c0_76, %c0_77], %106 {strides = array<i32>} : memref<2x16x128xf32, #tpu.memory_space<vmem>>, vector<1x16x128xf32>,
    return
  }
  func.func @transform_0(%arg0: i32) -> (i32, i32, i32) {
    %c0_i32 = arith.constant 0 : i32
    %c0_i32_0 = arith.constant 0 : i32
    %c0_i32_1 = arith.constant 0 : i32
    return %arg0, %c0_i32, %c0_i32_0 : i32, i32, i32
  }
  func.func @transform_1(%arg0: i32) -> (i32, i32, i32) {
    %c0_i32 = arith.constant 0 : i32
    %c0_i32_0 = arith.constant 0 : i32
    %c0_i32_1 = arith.constant 0 : i32
    %c0_i32_2 = arith.constant 0 : i32
    return %c0_i32, %c0_i32_0, %c0_i32_1 : i32, i32, i32
  }
  func.func @transform_2(%arg0: i32) -> (i32, i32) {
    %c0_i32 = arith.constant 0 : i32
    %c0_i32_0 = arith.constant 0 : i32
    %c0_i32_1 = arith.constant 0 : i32
    return %c0_i32, %c0_i32_0 : i32, i32
  }
  func.func @transform_3(%arg0: i32) -> (i32, i32, i32) {
    %c0_i32 = arith.constant 0 : i32
    %c0_i32_0 = arith.constant 0 : i32
    %c0_i32_1 = arith.constant 0 : i32
    return %arg0, %c0_i32, %c0_i32_0 : i32, i32, i32
  }
}

</mosaic_0001>

<bundles_post_ra>
// kernel: tpu_custom_call.1
= control target key start
LH: loop header
LB: loop body
LE: loop exit
PB: predicated region body
PF: predicated region fallthrough
CT: control target
= control target key end

     0   :  { %8 = vsyncpa [#allocation3], 0  ;;  %s1718_s0 = inlined_call_operand.hbm [shape: f32[2,8,144], index: 0, kind: input, shape index: {}]   ;;  %s1719_s1 = inlined_call_operand.hbm [shape: f32[9,8,16], index: 1, kind: input, shape index: {}]   ;;  %s1720_s2 = inlined_call_operand.vmem [shape: f32[16,1], index: 2, kind: input, shape index: {}]   ;;  %s1721_s3 = inlined_call_operand.hbm [shape: f32[2,16,128], index: 3, kind: output, shape index: {}]  }
   0x1   :  { %9 = vsyncpa [#allocation6], 0 }
   0x2   :  { %10 = vsyncpa [#allocation4], 0  ;;  %s15_s14 = sshll.u32 %s1718_s0, 4  ;;  %s1573_s15 = smov [#allocation2]   ;;  %s16_s14 = int_to_ptr.hbm [resolvable:$true] %s15_s14 }
   0x3   :  { %s17_s16 = sshll.u32 %s1573_s15, 4  ;;  %s28_s19 = sshll.u32 %s1719_s1, 4  ;;  %s18_s16 = int_to_ptr.vmem [resolvable:$true] %s17_s16  ;;  %s29_s19 = int_to_ptr.hbm [resolvable:$true] %s28_s19 }
   0x4   :  { %s1574_s20 = smov 256   ;;  %s1575_s21 = smov 16  }
   0x5   :  { %23 = dma.hbm_to_vmem [thread:$0]  %s16_s14, 512, %s18_s16, [#allocation3], %s1574_s20, %s1574_s20, %s1575_s21  }
   0x6   :  { %s1576_s22 = smov [#allocation5]   ;;  %s1577_s24 = smov 128  }
   0x7   :  { %s30_s23 = sshll.u32 %s1576_s22, 4  ;;  %s1578_s25 = smov 8   ;;  %s31_s23 = int_to_ptr.vmem [resolvable:$true] %s30_s23 }
   0x8   :  { %36 = dma.hbm_to_vmem [thread:$0]  %s29_s19, 1152, %s31_s23, [#allocation6], %s1577_s24, %s1577_s24, %s1578_s25  }
   0x9   :  { %1567 = dma.done.wait [#allocation3], 512  }
   0xa   :  { %1568 = vsyncadd [#allocation3], 4294966784 }
   0xb   :  { %1569 = dma.done.wait [#allocation6], 1152  }
   0xc   :  { %1570 = vsyncadd [#allocation6], 4294966144  ;;  %v1579_v0 = vmov 0   ;;  %v49_v1 = vld [vmem:[#allocation2] sm:$0xff]  ;;  %v50_v2 = vld [vmem:[#allocation2 + $0x8] sm:$0xff]  ;;  %s1580_s0 = smov 121  }
   0xd   :  { %1454 = vset.pattern.permute.xlu0 %v1579_v0  ;;  %1453 = vset.pattern.permute.xlu2 %v1579_v0  ;;  %v1423_v3 = vpack.i.bf16 %v50_v2, %v49_v1  ;;  %s1581_s1 = smov 124   ;;  %s1582_s26 = smov 122   ;;  %v1618_v4 = vld [vmem:[#allocation2 + $0x10] sm:$0xff]  ;;  %v708_v5 = vld [vmem:[#allocation2 + $0x18] sm:$0xff]  ;;  %v48_v7 = vld [vmem:[%s1720_s2 + $0x8] sm:$0xff]  ;;  %vm296_vm0 = vcmask 990208  }
   0xe   :  { %1395 = vmatpush.msra.mxu3 %v49_v1  ;;  %178 = vmatpush.msra.mxu1 %v49_v1  ;;  %s1583_s27 = smov 112   ;;  %s1584_s28 = smov 119   ;;  %v1621_v6 = vpack.i.bf16 %v708_v5, %v1618_v4  ;;  %v47_v8 = vld [vmem:[%s1720_s2] sm:$0xff]  ;;  %v259_v10 = vld [vmem:[#allocation5 + $0x18] sm:$0xff]  ;;  %v187_v11 = vld [vmem:[#allocation5 + $0x10] sm:$0xff]  ;;  %vm92_vm1 = vcmask 1014784  }
   0xf   :  { %1424 = vrot.lane.b32.xlu1 %v1423_v3, %s1580_s0  ;;  %1414 = vrot.lane.b32.xlu0 %v1423_v3, %s1581_s1  ;;  %s1585_s29 = smov 120   ;;  %s1586_s30 = smov 118   ;;  %v51_v9 = vld [vmem:[#allocation5] sm:$0xff]  ;;  %v53_v13 = vld [vmem:[#allocation5 + $0x8] sm:$0xff]  ;;  %v475_v16 = vld [vmem:[#allocation5 + $0x30] sm:$0xff]  ;;  %vm224_vm2 = vcmask 998400  }
  0x10   :  { %1419 = vrot.lane.b32.xlu2 %v1423_v3, %s1582_s26  ;;  %s1587_s4 = smov 116   ;;  %v331_v12 = vld [vmem:[#allocation5 + $0x20] sm:$0xff]  ;;  %v403_v14 = vld [vmem:[#allocation5 + $0x28] sm:$0xff]  ;;  %v547_v21 = vld [vmem:[#allocation5 + $0x38] sm:$0xff]  ;;  %vm368_vm3 = vcmask 982016   ;;  %vm440_vm4 = vcmask 973824  }
  0x11   :  { %v619_v15 = vld [vmem:[#allocation5 + $0x40] sm:$0xff]  ;;  %vm95_vm5 = vcmask 64512   ;;  %vm584_vm6 = vcmask 949248   ;;  %vm656_vm7 = vcmask 916480   ;;  %vm512_vm8 = vcmask 965632   ;;  %s1588_s2 = smov [#allocation7]  }
  0x12   :  { %s1342_s9 = sshll.u32 %s1588_s2, 4  ;;  %s1344_s12 = sshll.u32 %s1721_s3, 4  ;;  %s1343_s9 = int_to_ptr.vmem [resolvable:$true] %s1342_s9  ;;  %s1345_s12 = int_to_ptr.hbm [resolvable:$true] %s1344_s12 }
  0x17   :  { %1449 = vrot.lane.b32.xlu1 %v1423_v3, %s1583_s27  ;;  %1434 = vrot.lane.b32.xlu0 %v1423_v3, %s1584_s28 }
  0x18   :  { %1429 = vrot.lane.b32.xlu2 %v1423_v3, %s1585_s29 }
  0x1f   :  { %1461 = vrot.lane.b32.xlu1 %v1621_v6, %s1582_s26  ;;  %1439 = vrot.lane.b32.xlu0 %v1423_v3, %s1586_s30 }
  0x20   :  { %1444 = vrot.lane.b32.xlu2 %v1423_v3, %s1587_s4 }
  0x27   :  { %697 = vperm.xlu0 %1454, %v48_v7  }
  0x28   :  { %692 = vperm.xlu2 %1453, %v47_v8  }
  0x2f   :  { %1456 = vrot.lane.b32.xlu0 %v1621_v6, %s1581_s1 }
  0x30   :  { %1471 = vrot.lane.b32.xlu2 %v1621_v6, %s1585_s29 }
  0x37   :  { %1466 = vrot.lane.b32.xlu0 %v1621_v6, %s1580_s0 }
  0x3f   :  { %1476 = vrot.lane.b32.xlu0 %v1621_v6, %s1584_s28 }
  0x47   :  { %1481 = vrot.lane.b32.xlu0 %v1621_v6, %s1586_s30 }
  0x4f   :  { %1491 = vrot.lane.b32.xlu0 %v1621_v6, %s1583_s27 }
  0x54   :  { %125 = vxpose.xlu1.b32.start.end [1/1] (short) (narrow) %v51_v9, 16 }
  0x56   :  { %260 = vxpose.xlu2.b32.start.end [1/1] (short) (narrow) %v259_v10, 16 }
  0x64   :  { %188 = vxpose.xlu1.b32.start.end [1/1] (short) (narrow) %v187_v11, 16 }
  0x66   :  { %332 = vxpose.xlu2.b32.start.end [1/1] (short) (narrow) %v331_v12, 16 }
  0x6a   :  { %v1420_v17 = vpop.permute.xlu2 %1419 }
  0x6b   :  { %v1422_v18 = vunpack.i.h.bf16 %v1420_v17  ;;  %v1421_v19 = vunpack.i.l.bf16 %v1420_v17 }
  0x6d   :  { %v225_v29 = vsel %vm224_vm2, %v1421_v19, %v1422_v18 }
  0x71   :  { %54 = vxpose.xlu0.b32.start.end [1/1] (short) (narrow) %v53_v13, 16 }
  0x72   :  { %v1430_v30 = vpop.permute.xlu2 %1429 }
  0x73   :  { %v1432_v31 = vunpack.i.h.bf16 %v1430_v30  ;;  %v1431_v32 = vunpack.i.l.bf16 %v1430_v30 }
  0x74   :  { %404 = vxpose.xlu1.b32.start.end [1/1] (short) (narrow) %v403_v14, 16 }
  0x75   :  { %v369_v36 = vsel %vm368_vm3, %v1431_v32, %v1432_v31 }
  0x76   :  { %620 = vxpose.xlu2.b32.start.end [1/1] (short) (narrow) %v619_v15, 16 }
  0x7a   :  { %v1445_v39 = vpop.permute.xlu2 %1444 }
  0x7b   :  { %v1447_v54 = vunpack.i.h.bf16 %v1445_v39  ;;  %v1446_v55 = vunpack.i.l.bf16 %v1445_v39 }
  0x7d   :  { %v585_v58 = vsel %vm584_vm6, %v1446_v55, %v1447_v54 }
  0x81   :  { %v1425_v20 = vpop.permute.xlu1 %1424  ;;  %476 = vxpose.xlu0.b32.start.end [1/1] (short) (narrow) %v475_v16, 16  ;;  %v1415_v22 = vpop.permute.xlu0 %1414 }
  0x82   :  { %v1427_v23 = vunpack.i.h.bf16 %v1425_v20  ;;  %v1426_v24 = vunpack.i.l.bf16 %v1425_v20  ;;  %v1417_v25 = vunpack.i.h.bf16 %v1415_v22  ;;  %v1416_v26 = vunpack.i.l.bf16 %v1415_v22  ;;  %v1646_v41 = vpop.permute.xlu2 %692 }
  0x84   :  { %548 = vxpose.xlu1.b32.start.end [1/1] (short) (narrow) %v547_v21, 16  ;;  %v297_v27 = vsel %vm296_vm0, %v1426_v24, %v1427_v23  ;;  %v93_v28 = vsel %vm92_vm1, %v1416_v26, %v1417_v25 }
  0x85   :  { %320 = vmatpush.msrb.mxu3 %v297_v27  ;;  %117 = vmatpush.msra.mxu0 %v93_v28 }
  0x86   :  { %842 = vxpose.xlu2.b32.start.end [1/1] (short) (narrow) %v187_v11, 16  ;;  %1394 = vmatpush.msra.mxu2 %v93_v28 }
  0x87   :  { %392 = vmatpush.msrb.mxu0 %v369_v36 }
  0x88   :  { %248 = vmatpush.msrb.mxu2 %v225_v29 }
  0x89   :  { %v1435_v33 = vpop.permute.xlu0 %1434  ;;  %v1450_v43 = vpop.permute.xlu1 %1449 }
  0x8a   :  { %v1437_v34 = vunpack.i.h.bf16 %v1435_v33  ;;  %v1436_v35 = vunpack.i.l.bf16 %v1435_v33  ;;  %v1472_v44 = vpop.permute.xlu2 %1471  ;;  %v1452_v5 = vunpack.i.h.bf16 %v1450_v43  ;;  %v1451_v7 = vunpack.i.l.bf16 %v1450_v43 }
  0x8b   :  { %v1474_v8 = vunpack.i.h.bf16 %v1472_v44 }
  0x8c   :  { %v441_v37 = vsel %vm440_vm4, %v1436_v35, %v1437_v34 }
  0x8d   :  { %464 = vmatpush.msrb.mxu1 %v441_v37 }
  0x91   :  { %780 = vxpose.xlu0.b32.start.end [1/1] (short) (narrow) %v51_v9, 16  ;;  %v1642_v38 = vpop.permute.xlu0 %1439  ;;  %v1462_v47 = vpop.permute.xlu1 %1461  ;;  %v1473_v9 = vunpack.i.l.bf16 %v1472_v44 }
  0x92   :  { %v1464_v60 = vunpack.i.h.bf16 %v1462_v47  ;;  %v1463_v61 = vunpack.i.l.bf16 %v1462_v47 }
  0x94   :  { %711 = vxpose.xlu1.b32.start.end [1/1] (short) (narrow) %v53_v13, 16  ;;  %v878_v0 = vsel %vm224_vm2, %v1463_v61, %v1464_v60  ;;  %v1018_v13 = vsel %vm368_vm3, %v1473_v9, %v1474_v8 }
  0x96   :  { %982 = vxpose.xlu2.b32.start.end [1/1] (short) (narrow) %v331_v12, 16 }
  0x99   :  { %v1644_v40 = vpop.permute.xlu0 %697 }
  0xa1   :  { %912 = vxpose.xlu0.b32.start.end [1/1] (short) (narrow) %v259_v10, 16  ;;  %v1457_v42 = vpop.permute.xlu0 %1456 }
  0xa2   :  { %v1459_v48 = vunpack.i.h.bf16 %v1457_v42  ;;  %v1458_v49 = vunpack.i.l.bf16 %v1457_v42 }
  0xa4   :  { %1052 = vxpose.xlu1.b32.start.end [1/1] (short) (narrow) %v403_v14, 16  ;;  %v749_v53 = vsel %vm92_vm1, %v1458_v49, %v1459_v48  ;;  %v1442_v14 = vunpack.i.h.bf16 %v1642_v38 }
  0xa6   :  { %1122 = vxpose.xlu2.b32.start.end [1/1] (short) (narrow) %v475_v16, 16 }
  0xa9   :  { %v1467_v45 = vpop.permute.xlu0 %1466 }
  0xaa   :  { %v1469_v16 = vunpack.i.h.bf16 %v1467_v45  ;;  %v1468_v17 = vunpack.i.l.bf16 %v1467_v45 }
  0xac   :  { %v948_v20 = vsel %vm296_vm0, %v1468_v17, %v1469_v16 }
  0xb1   :  { %1192 = vxpose.xlu0.b32.start.end [1/1] (short) (narrow) %v547_v21, 16  ;;  %v1648_v52 = vpop.permute.xlu0 %1476 }
  0xb2   :  { %v1479_v32 = vunpack.i.h.bf16 %v1648_v52 }
  0xb9   :  { %v1482_v59 = vpop.permute.xlu0 %1481 }
  0xba   :  { %v1484_v23 = vunpack.i.h.bf16 %v1482_v59  ;;  %v1483_v24 = vunpack.i.l.bf16 %v1482_v59 }
  0xbc   :  { %v1158_v28 = vsel %vm512_vm8, %v1483_v24, %v1484_v23 }
  0xc1   :  { %1262 = vxpose.xlu0.b32.start.end [1/1] (short) (narrow) %v619_v15, 16  ;;  %v1658_v1 = vpop.permute.xlu0 %1491  ;;  %v1441_v15 = vunpack.i.l.bf16 %v1642_v38 }
  0xc2   :  { %v1494_v33 = vunpack.i.h.bf16 %v1658_v1  ;;  %v1493_v34 = vunpack.i.l.bf16 %v1658_v1 }
  0xc3   :  { %v513_v19 = vsel %vm512_vm8, %v1441_v15, %v1442_v14 }
  0xc4   :  { %v1298_v38 = vsel %vm656_vm7, %v1493_v34, %v1494_v33 }
  0xef   :  { %v276_v46 = vpop.trf.xlu2 }
  0xf7   :  { %v277_v50 = vpop.trf.xlu2 }
  0xf8   :  { %v141_v51 = vpop.trf.xlu1 }
  0xf9   :  { %1360 = vmatmul.msk.f32.vlgmr.msra.gmra.mxu1 %vm95_vm5, %v141_v51 }
  0xfa   :  { %772 = vmatpush.msra.mxu1 %v749_v53 }
  0xff   :  { %v348_v56 = vpop.trf.xlu2 }
 0x100   :  { %v142_v57 = vpop.trf.xlu1 }
 0x101   :  { %1361 = vmatmul.msk.f32.vlgmr.msra.gmra.mxu3 %vm95_vm5, %v142_v57 }
 0x102   :  { %608 = vmatpush.msra.mxu3 %v585_v58 }
 0x106   :  { %1486 = vrot.lane.b32.xlu1 %v1621_v6, %s1587_s4  ;;  %v657_v6 = vsel %vm656_vm7, %v1451_v7, %v1452_v5 }
 0x107   :  { %v349_v62 = vpop.trf.xlu2 }
 0x108   :  { %v204_v63 = vpop.trf.xlu1 }
 0x109   :  { %1364 = vmatmul.msk.f32.vlgmr.msrb.gmra.mxu3 %vm95_vm5, %v276_v46 }
 0x10a   :  { %901 = vmatpush.msrb.mxu3 %v878_v0 }
 0x10f   :  { %v636_v2 = vpop.trf.xlu2 }
 0x110   :  { %v205_v3 = vpop.trf.xlu1 }
 0x111   :  { %1365 = vmatmul.msk.f32.gmra.mxu3 %vm95_vm5, %v277_v50 }
 0x115   :  { %v70_v10 = vpop.trf.xlu0 }
 0x116   :  { %1358 = vmatmul.msk.f32.vlgmr.msra.gmra.mxu0 %vm95_vm5, %v70_v10 }
 0x117   :  { %680 = vmatpush.msra.mxu0 %v657_v6  ;;  %v637_v11 = vpop.trf.xlu2 }
 0x118   :  { %v420_v12 = vpop.trf.xlu1 }
 0x119   :  { %1368 = vmatmul.msk.f32.vlgmr.msrb.gmra.mxu1 %vm95_vm5, %v420_v12 }
 0x11a   :  { %1041 = vmatpush.msrb.mxu1 %v1018_v13 }
 0x11d   :  { %v71_v18 = vpop.trf.xlu0 }
 0x11e   :  { %1359 = vmatmul.msk.f32.vlgmr.msra.gmra.mxu2 %vm95_vm5, %v71_v18  ;;  %1366 = vmatmul.msk.f32.vlgmr.msrb.gmra.mxu0 %vm95_vm5, %v348_v56 }
 0x11f   :  { %536 = vmatpush.msra.mxu2 %v513_v19  ;;  %971 = vmatpush.msrb.mxu0 %v948_v20  ;;  %v858_v21 = vpop.trf.xlu2 }
 0x120   :  { %v421_v22 = vpop.trf.xlu1 }
 0x121   :  { %1369 = vmatmul.msk.f32.gmra.mxu1 %vm95_vm5, %v421_v22 }
 0x125   :  { %v492_v25 = vpop.trf.xlu0 }
 0x126   :  { %1362 = vmatmul.msk.f32.vlgmr.msrb.gmra.mxu2 %vm95_vm5, %v204_v63  ;;  %1367 = vmatmul.msk.f32.gmra.mxu0 %vm95_vm5, %v349_v62 }
 0x127   :  { %833 = vmatpush.msrb.mxu2 %v1618_v4  ;;  %v859_v26 = vpop.trf.xlu2  ;;  %v1478_v4 = vunpack.i.l.bf16 %v1648_v52 }
 0x128   :  { %v564_v27 = vpop.trf.xlu1 }
 0x129   :  { %1372 = vmatmul.msk.f32.vlgmr.msra.gmra.mxu3 %vm95_vm5, %v564_v27  ;;  %v1088_v36 = vsel %vm440_vm4, %v1478_v4, %v1479_v32 }
 0x12a   :  { %1181 = vmatpush.msra.mxu3 %v1158_v28 }
 0x12d   :  { %v493_v29 = vpop.trf.xlu0 }
 0x12e   :  { %1363 = vmatmul.msk.f32.gmra.mxu2 %vm95_vm5, %v205_v3  ;;  %1374 = vmatmul.msk.f32.vlgmr.msra.gmra.mxu0 %vm95_vm5, %v636_v2 }
 0x12f   :  { %v998_v31 = vpop.trf.xlu2 }
 0x130   :  { %v565_v30 = vpop.trf.xlu1 }
 0x131   :  { %1373 = vmatmul.msk.f32.gmra.mxu3 %vm95_vm5, %v565_v30 }
 0x135   :  { %v796_v35 = vpop.trf.xlu0 }
 0x136   :  { %1370 = vmatmul.msk.f32.vlgmr.msra.gmra.mxu2 %vm95_vm5, %v492_v25  ;;  %1375 = vmatmul.msk.f32.gmra.mxu0 %vm95_vm5, %v637_v11 }
 0x137   :  { %1111 = vmatpush.msra.mxu2 %v1088_v36  ;;  %v999_v39 = vpop.trf.xlu2 }
 0x138   :  { %v727_v37 = vpop.trf.xlu1 }
 0x139   :  { %1376 = vmatmul.msk.f32.vlgmr.msra.gmra.mxu1 %vm95_vm5, %v727_v37  ;;  %1380 = vmatmul.msk.f32.vlgmr.msrb.gmra.mxu3 %vm95_vm5, %v858_v21 }
 0x13a   :  { %1321 = vmatpush.msra.mxu1 %v1298_v38 }
 0x13d   :  { %v797_v42 = vpop.trf.xlu0 }
 0x13e   :  { %1371 = vmatmul.msk.f32.gmra.mxu2 %vm95_vm5, %v493_v29 }
 0x13f   :  { %v1138_v44 = vpop.trf.xlu2 }
 0x140   :  { %v728_v43 = vpop.trf.xlu1 }
 0x141   :  { %1381 = vmatmul.msk.f32.gmra.mxu3 %vm95_vm5, %v859_v26  ;;  %1377 = vmatmul.msk.f32.gmra.mxu1 %vm95_vm5, %v728_v43 }
 0x145   :  { %v928_v45 = vpop.trf.xlu0 }
 0x146   :  { %1378 = vmatmul.msk.f32.vlgmr.msrb.gmra.mxu2 %vm95_vm5, %v796_v35  ;;  %1382 = vmatmul.msk.f32.vlgmr.msrb.gmra.mxu0 %vm95_vm5, %v928_v45 }
 0x147   :  { %v1139_v47 = vpop.trf.xlu2 }
 0x148   :  { %v1068_v48 = vpop.trf.xlu1 }
 0x149   :  { %1388 = vmatmul.msk.f32.vlgmr.msra.gmra.mxu3 %vm95_vm5, %v1138_v44  ;;  %1384 = vmatmul.msk.f32.vlgmr.msrb.gmra.mxu1 %vm95_vm5, %v998_v31 }
 0x14d   :  { %v929_v46 = vpop.trf.xlu0 }
 0x14e   :  { %1379 = vmatmul.msk.f32.gmra.mxu2 %vm95_vm5, %v797_v42  ;;  %1383 = vmatmul.msk.f32.gmra.mxu0 %vm95_vm5, %v929_v46 }
 0x150   :  { %v1069_v50 = vpop.trf.xlu1 }
 0x151   :  { %1389 = vmatmul.msk.f32.gmra.mxu3 %vm95_vm5, %v1139_v47  ;;  %1385 = vmatmul.msk.f32.gmra.mxu1 %vm95_vm5, %v999_v39 }
 0x155   :  { %v1208_v49 = vpop.trf.xlu0 }
 0x156   :  { %1386 = vmatmul.msk.f32.vlgmr.msra.gmra.mxu2 %vm95_vm5, %v1068_v48 }
 0x15d   :  { %v1209_v51 = vpop.trf.xlu0 }
 0x15e   :  { %1387 = vmatmul.msk.f32.gmra.mxu2 %vm95_vm5, %v1069_v50 }
 0x165   :  { %v1278_v52 = vpop.trf.xlu0 }
 0x166   :  { %1392 = vmatmul.msk.f32.vlgmr.msra.gmra.mxu1 %vm95_vm5, %v1278_v52 }
 0x16d   :  { %v1279_v53 = vpop.trf.xlu0 }
 0x16e   :  { %1393 = vmatmul.msk.f32.gmra.mxu1 %vm95_vm5, %v1279_v53 }
 0x176   :  { %v180_v63 = vpop.f32.mrf.mxu1 }
 0x178   :  { %v1487_v54 = vpop.permute.xlu1 %1486 }
 0x179   :  { %v1489_v55 = vunpack.i.h.bf16 %v1487_v54  ;;  %v1488_v56 = vunpack.i.l.bf16 %v1487_v54 }
 0x17b   :  { %v1228_v57 = vsel %vm584_vm6, %v1488_v56, %v1489_v55 }
 0x17c   :  { %1251 = vmatpush.msra.mxu0 %v1228_v57 }
 0x17d   :  { %1390 = vmatmul.msk.f32.vlgmr.msra.gmra.mxu0 %vm95_vm5, %v1208_v49 }
 0x184   :  { %v183_v58 = vpop.f32.mrf.mxu3 }
 0x185   :  { %1391 = vmatmul.msk.f32.gmra.mxu0 %vm95_vm5, %v1209_v51 }
 0x18c   :  { %v322_v61 = vpop.f32.mrf.mxu3 }
 0x193   :  { %v119_v59 = vpop.f32.mrf.mxu0 }
 0x194   :  { %v181_v1 = vadd.f32 %v180_v63, %v119_v59  ;;  %v325_v3 = vpop.f32.mrf.mxu3 }
 0x196   :  { %v466_v10 = vpop.f32.mrf.mxu1 }
 0x19b   :  { %v394_v62 = vpop.f32.mrf.mxu0 }
 0x19e   :  { %v469_v20 = vpop.f32.mrf.mxu1 }
 0x1a1   :  { %v122_v60 = vpop.f32.mrf.mxu2 }
 0x1a2   :  { %v184_v9 = vadd.f32 %v183_v58, %v122_v60 }
 0x1a3   :  { %v397_v5 = vpop.f32.mrf.mxu0 }
 0x1a9   :  { %v250_v0 = vpop.f32.mrf.mxu2 }
 0x1aa   :  { %v256_v2 = vadd.f32 %v250_v0, %v181_v1 }
 0x1ab   :  { %v682_v16 = vpop.f32.mrf.mxu0 }
 0x1ac   :  { %v328_v7 = vadd.f32 %v322_v61, %v256_v2  ;;  %v610_v12 = vpop.f32.mrf.mxu3 }
 0x1ae   :  { %v400_v6 = vadd.f32 %v394_v62, %v328_v7 }
 0x1b0   :  { %v472_v13 = vadd.f32 %v466_v10, %v400_v6 }
 0x1b1   :  { %v253_v8 = vpop.f32.mrf.mxu2 }
 0x1b2   :  { %v257_v11 = vadd.f32 %v253_v8, %v184_v9 }
 0x1b3   :  { %v685_v28 = vpop.f32.mrf.mxu0 }
 0x1b4   :  { %v329_v14 = vadd.f32 %v325_v3, %v257_v11  ;;  %v613_v25 = vpop.f32.mrf.mxu3 }
 0x1b6   :  { %v401_v18 = vadd.f32 %v397_v5, %v329_v14  ;;  %v774_v4 = vpop.f32.mrf.mxu1 }
 0x1b8   :  { %v473_v22 = vadd.f32 %v469_v20, %v401_v18 }
 0x1b9   :  { %v538_v15 = vpop.f32.mrf.mxu2 }
 0x1ba   :  { %v544_v17 = vadd.f32 %v538_v15, %v472_v13 }
 0x1bc   :  { %v616_v19 = vadd.f32 %v610_v12, %v544_v17  ;;  %v903_v35 = vpop.f32.mrf.mxu3 }
 0x1be   :  { %v688_v21 = vadd.f32 %v682_v16, %v616_v19  ;;  %v777_v34 = vpop.f32.mrf.mxu1 }
 0x1c0   :  { %v700_v23 = vadd.f32 %v1646_v41, %v688_v21 }
 0x1c1   :  { %v541_v24 = vpop.f32.mrf.mxu2 }
 0x1c2   :  { %v702_v26 = vmax.f32 %v700_v23, 0.0  ;;  %v545_v27 = vadd.f32 %v541_v24, %v473_v22 }
 0x1c3   :  { %v973_v39 = vpop.f32.mrf.mxu0 }
 0x1c4   :  { %704 = vst [vmem:[#allocation7] sm:$0xff] %v702_v26  ;;  %v617_v29 = vadd.f32 %v613_v25, %v545_v27  ;;  %v906_v43 = vpop.f32.mrf.mxu3 }
 0x1c6   :  { %v689_v30 = vadd.f32 %v685_v28, %v617_v29  ;;  %v1043_v38 = vpop.f32.mrf.mxu1 }
 0x1c8   :  { %v701_v31 = vadd.f32 %v1644_v40, %v689_v30 }
 0x1c9   :  { %v835_v33 = vpop.f32.mrf.mxu2 }
 0x1ca   :  { %v703_v32 = vmax.f32 %v701_v31, 0.0  ;;  %v836_v36 = vadd.f32 %v835_v33, %v774_v4 }
 0x1cb   :  { %v976_v50 = vpop.f32.mrf.mxu0 }
 0x1cc   :  { %705 = vst [vmem:[#allocation7 + $0x8] sm:$0xff] %v703_v32  ;;  %v909_v42 = vadd.f32 %v903_v35, %v836_v36  ;;  %v1183_v51 = vpop.f32.mrf.mxu3 }
 0x1ce   :  { %v979_v45 = vadd.f32 %v973_v39, %v909_v42  ;;  %v1046_v47 = vpop.f32.mrf.mxu1 }
 0x1d0   :  { %v1049_v49 = vadd.f32 %v1043_v38, %v979_v45 }
 0x1d1   :  { %v838_v37 = vpop.f32.mrf.mxu2 }
 0x1d2   :  { %v839_v44 = vadd.f32 %v838_v37, %v777_v34 }
 0x1d4   :  { %v910_v48 = vadd.f32 %v906_v43, %v839_v44  ;;  %v1186_v62 = vpop.f32.mrf.mxu3 }
 0x1d6   :  { %v980_v53 = vadd.f32 %v976_v50, %v910_v48 }
 0x1d8   :  { %v1050_v56 = vadd.f32 %v1046_v47, %v980_v53 }
 0x1d9   :  { %v1113_v46 = vpop.f32.mrf.mxu2 }
 0x1da   :  { %v1119_v52 = vadd.f32 %v1113_v46, %v1049_v49 }
 0x1dc   :  { %v1189_v55 = vadd.f32 %v1183_v51, %v1119_v52 }
 0x1e1   :  { %v1116_v57 = vpop.f32.mrf.mxu2 }
 0x1e2   :  { %v1120_v60 = vadd.f32 %v1116_v57, %v1050_v56 }
 0x1e3   :  { %v1323_v54 = vpop.f32.mrf.mxu1 }
 0x1e4   :  { %v1190_v0 = vadd.f32 %v1186_v62, %v1120_v60 }
 0x1eb   :  { %v1326_v3 = vpop.f32.mrf.mxu1 }
 0x1fa   :  { %v1253_v58 = vpop.f32.mrf.mxu0 }
 0x1fb   :  { %v1259_v59 = vadd.f32 %v1253_v58, %v1189_v55 }
 0x1fd   :  { %v1329_v61 = vadd.f32 %v1323_v54, %v1259_v59 }
 0x1ff   :  { %v1331_v63 = vadd.f32 %v1329_v61, %v1646_v41 }
 0x201   :  { %v1333_v1 = vmax.f32 %v1331_v63, 0.0 }
 0x202   :  { %v1256_v2 = vpop.f32.mrf.mxu0 }
 0x203   :  { %1336 = vst [vmem:[#allocation7 + $0x10] sm:$0xff] %v1333_v1  ;;  %v1260_v5 = vadd.f32 %v1256_v2, %v1190_v0 }
 0x205   :  { %v1330_v7 = vadd.f32 %v1326_v3, %v1260_v5 }
 0x207   :  { %v1332_v8 = vadd.f32 %v1330_v7, %v1644_v40 }
 0x209   :  { %v1334_v9 = vmax.f32 %v1332_v8, 0.0 }
 0x20b   :  { %1337 = vst [vmem:[#allocation7 + $0x18] sm:$0xff] %v1334_v9 }
 0x20c   :  { %1350 = dma.vmem_to_hbm [thread:$0]  %s1343_s9, 512, %s1345_s12, [#allocation4], %s1577_s24, %s1577_s24, %s1578_s25  }
 0x20d   :  { %1571 = dma.done.wait [#allocation4], 512  }
 0x20e   :  { %1572 = vsyncadd [#allocation4], 4294966784 }
 0x20f   :  { %1355 = vsyncpa [#allocation3], 1 }
 0x210   :  { %1356 = vsyncpa [#allocation6], 1 }
 0x211   :  { %1357 = vsyncpa [#allocation4], 1 }

</bundles_post_ra>
